<compile_context>
chip_gen: v7x
topology: tpu7x:2x2x1
jax: 0.10.0
libtpu: 0.0.40
codegen_flags: <defaults>
</compile_context>

<pallas_src>
import math

import jax
import jax.numpy as jnp
import numpy as np
from jax.experimental import pallas as pl
from jax.experimental.pallas import tpu as pltpu

# ---- module hyper-parameters (from the PyTorch script) ----------------------
EMBED_SIZE = 16
HIDDEN_SIZE = 128
NUM_LAYERS = 2
TEXT = "hello world this is an example of word level text generation using RNN."
WORDS = TEXT.split()
WORD_TO_IX = {word: i for i, word in enumerate(set(WORDS))}
VOCAB_SIZE = len(WORD_TO_IX)  # = 13
VOCAB_PAD = 128               # lane-dense padded vocab for the fc output


# ---- Pallas kernel: full T-step 2-layer RNN + hoisted fc, single invocation ----
def word_rnn_kernel(
    x_ref,       # (T*B, E)   bf16 embedded input, time-major rows (row = t*B + b)
    h0_ref,      # (L, B, H)  f32 initial hidden state
    w_ref,       # (E+4H, H)  bf16 packed weights: [W_ih0^T; W_hh0^T; W_ih1^T; W_hh1^T; W_fc^T(padded)]
    b_ref,       # (8, 128)   f32 packed biases: row0=b_ih0+b_hh0, row1=b_ih1+b_hh1, row2=b_fc(padded)
    out_ref,     # (T*B, VP)  f32 padded logits, time-major rows
    hn_ref,      # (L, B, H)  f32 final hidden state (aliased with h0_ref's HBM buffer)
    h1_acc_ref,  # (T*B, H)   f32 VMEM scratch: per-step layer-1 hidden states
):
    E = x_ref.shape[1]
    B = h0_ref.shape[1]
    H = h0_ref.shape[2]
    T = out_ref.shape[0] // B

    # Static, bf16-tile-aligned slices of the packed weight slab.
    wih0 = w_ref[0:E, :]              # (E, H)  bf16, offset 0
    whh0 = w_ref[E:E + H, :]          # (H, H)  bf16, offset 16
    w1 = w_ref[E + H:E + 3 * H, :]    # (2H, H) bf16, offset 144
    # NOTE: wfc (offset 400) is deliberately loaded only AFTER the loop.

    b0 = b_ref[0:1, :]                # (1, H)  f32
    b1 = b_ref[1:2, :]                # (1, H)  f32
    bfc = b_ref[2:3, :]               # (1, VP) f32

    # --- Hoisted layer-0 input projection for ALL timesteps (off the serial chain) ---
    xw0 = (
        jnp.dot(x_ref[...], wih0, preferred_element_type=jnp.float32) + b0
    )  # (T*B, H) f32

    h0f = h0_ref[0]                   # (B, H) f32
    h1f = h0_ref[1]                   # (B, H) f32
    h0 = h0f.astype(jnp.bfloat16)
    h1 = h1f.astype(jnp.bfloat16)

    # --- Serial recurrence, fully unrolled (T is small & static) ---
    for t in range(T):
        x_t = xw0[t * B:(t + 1) * B, :]                                    # (B, H) f32
        # layer 0: recurrent matmul only (input proj already folded into x_t)
        h0f = jnp.tanh(x_t + jnp.dot(h0, whh0, preferred_element_type=jnp.float32))
        h0 = h0f.astype(jnp.bfloat16)
        # layer 1: fused ih/hh matmul over the 2H = 256-deep contraction
        z1 = jnp.concatenate([h0, h1], axis=-1)                            # (B, 2H) bf16
        h1f = jnp.tanh(jnp.dot(z1, w1, preferred_element_type=jnp.float32) + b1)
        h1 = h1f.astype(jnp.bfloat16)
        # stash h1 for the hoisted fc; this store is off the dependent chain
        h1_acc_ref[t * B:(t + 1) * B, :] = h1f

    # --- Hoisted fc projection: one matmul + one lane/sublane-dense store ---
    wfc = w_ref[E + 3 * H:E + 4 * H, :]                                    # (H, VP) bf16
    h1_all = h1_acc_ref[...].astype(jnp.bfloat16)                          # (T*B, H)
    out_ref[...] = jnp.dot(h1_all, wfc, preferred_element_type=jnp.float32) + bfc

    # final hidden state written once, after the loop
    hn_ref[0] = h0f
    hn_ref[1] = h1f


# ---- one-time weight prep (cache across calls) -------------------------------
def pack_params(params):
    E, H, V, VP = EMBED_SIZE, HIDDEN_SIZE, VOCAB_SIZE, VOCAB_PAD
    wih0 = params["weight_ih_l0"].T.astype(jnp.float32)                    # (E, H)
    whh0 = params["weight_hh_l0"].T.astype(jnp.float32)                    # (H, H)
    w1 = jnp.concatenate(
        [params["weight_ih_l1"].T, params["weight_hh_l1"].T], axis=0
    ).astype(jnp.float32)                                                  # (2H, H)
    wfc = jnp.zeros((H, VP), jnp.float32).at[:, :V].set(
        params["fc_weight"].T.astype(jnp.float32))                         # (H, VP)
    w_slab = jnp.concatenate([wih0, whh0, w1, wfc], axis=0).astype(jnp.bfloat16)

    b_slab = jnp.zeros((8, VP), jnp.float32)
    b_slab = b_slab.at[0, :H].set(
        (params["bias_ih_l0"] + params["bias_hh_l0"]).astype(jnp.float32))
    b_slab = b_slab.at[1, :H].set(
        (params["bias_ih_l1"] + params["bias_hh_l1"]).astype(jnp.float32))
    b_slab = b_slab.at[2, :V].set(params["fc_bias"].astype(jnp.float32))

    return {
        "embedding": params["embedding"].astype(jnp.float32),
        "w_slab": w_slab,   # (E + 4H, 128) bf16
        "b_slab": b_slab,   # (8, 128) f32
    }


# ---- forward pass matching WordRNN.forward ------------------------------------
@jax.jit
def word_rnn_forward(x_tokens, hidden, packed):
    """x_tokens: int32 (B, T); hidden: f32 (L, B, H); packed: output of pack_params.
    Returns (out (B, T, V), hidden (L, B, H))."""
    B, T = x_tokens.shape
    E, H, V, L, VP = EMBED_SIZE, HIDDEN_SIZE, VOCAB_SIZE, NUM_LAYERS, VOCAB_PAD

    # TODO(synk): embedding gather stays in plain JAX; a Pallas gather is pointless at V=13, E=16.
    x_emb = jnp.take(packed["embedding"], x_tokens, axis=0)                # (B, T, E)
    x_tm = jnp.transpose(x_emb, (1, 0, 2)).reshape(T * B, E).astype(jnp.bfloat16)

    vspec = pl.BlockSpec(memory_space=pltpu.MemorySpace.VMEM)
    out_tm, h_n = pl.pallas_call(
        word_rnn_kernel,
        out_shape=(
            jax.ShapeDtypeStruct((T * B, VP), jnp.float32),
            jax.ShapeDtypeStruct((L, B, H), jnp.float32),
        ),
        in_specs=[vspec] * 4,
        out_specs=(vspec, vspec),
        scratch_shapes=[pltpu.VMEM((T * B, H), jnp.float32)],
        input_output_aliases={1: 1},   # hidden -> h_n
    )(x_tm, hidden.astype(jnp.float32), packed["w_slab"], packed["b_slab"])

    # Back to batch_first (B, T, V); drop the padded vocab lanes.
    out = jnp.transpose(out_tm.reshape(T, B, VP), (1, 0, 2))[:, :, :V]
    return out, h_n


# ---- deterministic parameter init (PyTorch shapes) ---------------------------
def init_params(key):
    E, H, V = EMBED_SIZE, HIDDEN_SIZE, VOCAB_SIZE
    ks = jax.random.split(key, 12)
    k_rnn = 1.0 / math.sqrt(H)
    k_fc = 1.0 / math.sqrt(H)
    u = lambda k, shape, bound: jax.random.uniform(
        k, shape, jnp.float32, -bound, bound
    )
    return {
        "embedding": jax.random.normal(ks[0], (V, E), jnp.float32),
        "weight_ih_l0": u(ks[1], (H, E), k_rnn),
        "weight_hh_l0": u(ks[2], (H, H), k_rnn),
        "bias_ih_l0": u(ks[3], (H,), k_rnn),
        "bias_hh_l0": u(ks[4], (H,), k_rnn),
        "weight_ih_l1": u(ks[5], (H, H), k_rnn),
        "weight_hh_l1": u(ks[6], (H, H), k_rnn),
        "bias_ih_l1": u(ks[7], (H,), k_rnn),
        "bias_hh_l1": u(ks[8], (H,), k_rnn),
        "fc_weight": u(ks[9], (V, H), k_fc),
        "fc_bias": u(ks[10], (V,), k_fc),
    }


# ---- pure-JAX reference for a sanity check -----------------------------------
def ref_forward(x_tokens, hidden, params):
    B, T = x_tokens.shape
    x_emb = jnp.take(params["embedding"], x_tokens, axis=0)  # (B, T, E)
    h0, h1 = hidden[0], hidden[1]
    outs = []
    for t in range(T):
        x_t = x_emb[:, t, :]
        h0 = jnp.tanh(
            x_t @ params["weight_ih_l0"].T + params["bias_ih_l0"]
            + h0 @ params["weight_hh_l0"].T + params["bias_hh_l0"]
        )
        h1 = jnp.tanh(
            h0 @ params["weight_ih_l1"].T + params["bias_ih_l1"]
            + h1 @ params["weight_hh_l1"].T + params["bias_hh_l1"]
        )
        outs.append(h1 @ params["fc_weight"].T + params["fc_bias"])
    out = jnp.stack(outs, axis=1)  # (B, T, V)
    return out, jnp.stack([h0, h1], axis=0)


if __name__ == "__main__":
    key = jax.random.PRNGKey(0)
    k_param, k_tok = jax.random.split(key)

    B, T = 2, 8
    params = init_params(k_param)
    packed = pack_params(params)  # one-time weight prep, reused across calls
    x_tokens = jax.random.randint(k_tok, (B, T), 0, VOCAB_SIZE, dtype=jnp.int32)
    hidden0 = jnp.zeros((NUM_LAYERS, B, HIDDEN_SIZE), jnp.float32)  # init_hidden

    out, h_n = word_rnn_forward(x_tokens, hidden0, packed)
    out, h_n = jax.block_until_ready((out, h_n))

    # sanity check against pure-JAX f32 reference (tolerance covers bf16 MXU operands)
    out_ref, h_ref = ref_forward(x_tokens, hidden0, params)
    assert out.shape == (B, T, VOCAB_SIZE) and h_n.shape == (NUM_LAYERS, B, HIDDEN_SIZE)
    np.testing.assert_allclose(np.asarray(out), np.asarray(out_ref), rtol=4e-2, atol=4e-2)
    np.testing.assert_allclose(np.asarray(h_n), np.asarray(h_ref), rtol=4e-2, atol=4e-2)

    print("KERNEL_OK")
</pallas_src>

<mosaic_0001>
module attributes {stable_mosaic.version = 11 : i64} {
  func.func @word_rnn_kernel(%arg0: memref<16x16xbf16, #tpu.memory_space<vmem>>, %arg1: memref<2x2x128xf32, #tpu.memory_space<vmem>>, %arg2: memref<528x128xbf16, #tpu.memory_space<vmem>>, %arg3: memref<8x128xf32, #tpu.memory_space<vmem>>, %arg4: memref<16x128xf32, #tpu.memory_space<vmem>>, %arg5: memref<2x2x128xf32, #tpu.memory_space<vmem>>, %arg6: memref<16x128xf32, #tpu.memory_space<vmem>>) attributes {dimension_semantics = [], scalar_prefetch = 0 : i64, scratch_operands = 1 : i64, tpu.core_type = #tpu.core_type<tc>} {
    %c0 = arith.constant 0 : index
    %c0_0 = arith.constant 0 : index
    %0 = vector.load %arg2[%c0, %c0_0] : memref<528x128xbf16, #tpu.memory_space<vmem>>, vector<16x128xbf16>
    %c16 = arith.constant 16 : index
    %c0_1 = arith.constant 0 : index
    %1 = vector.load %arg2[%c16, %c0_1] : memref<528x128xbf16, #tpu.memory_space<vmem>>, vector<128x128xbf16>
    %c144 = arith.constant 144 : index
    %c0_2 = arith.constant 0 : index
    %2 = vector.load %arg2[%c144, %c0_2] : memref<528x128xbf16, #tpu.memory_space<vmem>>, vector<256x128xbf16>
    %c0_3 = arith.constant 0 : index
    %c0_4 = arith.constant 0 : index
    %3 = vector.load %arg3[%c0_3, %c0_4] : memref<8x128xf32, #tpu.memory_space<vmem>>, vector<1x128xf32>
    %c1 = arith.constant 1 : index
    %c0_5 = arith.constant 0 : index
    %4 = vector.load %arg3[%c1, %c0_5] : memref<8x128xf32, #tpu.memory_space<vmem>>, vector<1x128xf32>
    %c2 = arith.constant 2 : index
    %c0_6 = arith.constant 0 : index
    %5 = vector.load %arg3[%c2, %c0_6] : memref<8x128xf32, #tpu.memory_space<vmem>>, vector<1x128xf32>
    %c0_7 = arith.constant 0 : index
    %c0_8 = arith.constant 0 : index
    %6 = vector.load %arg0[%c0_7, %c0_8] : memref<16x16xbf16, #tpu.memory_space<vmem>>, vector<16x16xbf16>
    %cst = arith.constant dense<0.000000e+00> : vector<16x128xf32>
    %7 = tpu.matmul %6, %0, %cst {dimension_numbers = #tpu.dot_dimension_numbers<[1], [0], [0], [1], [0, 0, 1, 1], [], []>} : vector<16x16xbf16>, vector<16x128xbf16>, vector<16x128xf32> -> vector<16x128xf32>
    %8 = vector.broadcast %3 : vector<1x128xf32> to vector<16x128xf32>
    %9 = arith.addf %7, %8 : vector<16x128xf32>
    %c0_9 = arith.constant 0 : index
    %c0_10 = arith.constant 0 : index
    %c0_11 = arith.constant 0 : index
    %10 = vector.load %arg1[%c0_9, %c0_10, %c0_11] : memref<2x2x128xf32, #tpu.memory_space<vmem>>, vector<1x2x128xf32>
    %11 = vector.shape_cast %10 : vector<1x2x128xf32> to vector<2x128xf32>
    %c1_12 = arith.constant 1 : index
    %c0_13 = arith.constant 0 : index
    %c0_14 = arith.constant 0 : index
    %12 = vector.load %arg1[%c1_12, %c0_13, %c0_14] : memref<2x2x128xf32, #tpu.memory_space<vmem>>, vector<1x2x128xf32>
    %13 = vector.shape_cast %12 : vector<1x2x128xf32> to vector<2x128xf32>
    %14 = arith.truncf %11 : vector<2x128xf32> to vector<2x128xbf16>
    %15 = arith.truncf %13 : vector<2x128xf32> to vector<2x128xbf16>
    %16 = vector.extract_strided_slice %9 {offsets = [0, 0], sizes = [2, 128], strides = [1, 1]} : vector<16x128xf32> to vector<2x128xf32>
    %cst_15 = arith.constant dense<0.000000e+00> : vector<2x128xf32>
    %17 = tpu.matmul %14, %1, %cst_15 {dimension_numbers = #tpu.dot_dimension_numbers<[1], [0], [0], [1], [0, 0, 1, 1], [], []>} : vector<2x128xbf16>, vector<128x128xbf16>, vector<2x128xf32> -> vector<2x128xf32>
    %18 = arith.addf %16, %17 : vector<2x128xf32>
    %19 = math.tanh %18 : vector<2x128xf32>
    %20 = arith.truncf %19 : vector<2x128xf32> to vector<2x128xbf16>
    %21 = tpu.concatenate %20, %15 in 1 : vector<2x128xbf16>, vector<2x128xbf16> -> vector<2x256xbf16>
    %cst_16 = arith.constant dense<0.000000e+00> : vector<2x128xf32>
    %22 = tpu.matmul %21, %2, %cst_16 {dimension_numbers = #tpu.dot_dimension_numbers<[1], [0], [0], [1], [0, 0, 1, 1], [], []>} : vector<2x256xbf16>, vector<256x128xbf16>, vector<2x128xf32> -> vector<2x128xf32>
    %23 = vector.broadcast %4 : vector<1x128xf32> to vector<2x128xf32>
    %24 = arith.addf %22, %23 : vector<2x128xf32>
    %25 = math.tanh %24 : vector<2x128xf32>
    %26 = arith.truncf %25 : vector<2x128xf32> to vector<2x128xbf16>
    %c0_17 = arith.constant 0 : index
    %c0_18 = arith.constant 0 : index
    %27 = vector.load %arg6[%c0_17, %c0_18] : memref<16x128xf32, #tpu.memory_space<vmem>>, vector<2x128xf32>
    tpu.vector_store %arg6[%c0_17, %c0_18], %25 {strides = array<i32>} : memref<16x128xf32, #tpu.memory_space<vmem>>, vector<2x128xf32>,
    %28 = vector.extract_strided_slice %9 {offsets = [2, 0], sizes = [2, 128], strides = [1, 1]} : vector<16x128xf32> to vector<2x128xf32>
    %cst_19 = arith.constant dense<0.000000e+00> : vector<2x128xf32>
    %29 = tpu.matmul %20, %1, %cst_19 {dimension_numbers = #tpu.dot_dimension_numbers<[1], [0], [0], [1], [0, 0, 1, 1], [], []>} : vector<2x128xbf16>, vector<128x128xbf16>, vector<2x128xf32> -> vector<2x128xf32>
    %30 = arith.addf %28, %29 : vector<2x128xf32>
    %31 = math.tanh %30 : vector<2x128xf32>
    %32 = arith.truncf %31 : vector<2x128xf32> to vector<2x128xbf16>
    %33 = tpu.concatenate %32, %26 in 1 : vector<2x128xbf16>, vector<2x128xbf16> -> vector<2x256xbf16>
    %cst_20 = arith.constant dense<0.000000e+00> : vector<2x128xf32>
    %34 = tpu.matmul %33, %2, %cst_20 {dimension_numbers = #tpu.dot_dimension_numbers<[1], [0], [0], [1], [0, 0, 1, 1], [], []>} : vector<2x256xbf16>, vector<256x128xbf16>, vector<2x128xf32> -> vector<2x128xf32>
    %35 = vector.broadcast %4 : vector<1x128xf32> to vector<2x128xf32>
    %36 = arith.addf %34, %35 : vector<2x128xf32>
    %37 = math.tanh %36 : vector<2x128xf32>
    %38 = arith.truncf %37 : vector<2x128xf32> to vector<2x128xbf16>
    %c2_21 = arith.constant 2 : index
    %c0_22 = arith.constant 0 : index
    %39 = vector.load %arg6[%c2_21, %c0_22] : memref<16x128xf32, #tpu.memory_space<vmem>>, vector<2x128xf32>
    tpu.vector_store %arg6[%c2_21, %c0_22], %37 {strides = array<i32>} : memref<16x128xf32, #tpu.memory_space<vmem>>, vector<2x128xf32>,
    %40 = vector.extract_strided_slice %9 {offsets = [4, 0], sizes = [2, 128], strides = [1, 1]} : vector<16x128xf32> to vector<2x128xf32>
    %cst_23 = arith.constant dense<0.000000e+00> : vector<2x128xf32>
    %41 = tpu.matmul %32, %1, %cst_23 {dimension_numbers = #tpu.dot_dimension_numbers<[1], [0], [0], [1], [0, 0, 1, 1], [], []>} : vector<2x128xbf16>, vector<128x128xbf16>, vector<2x128xf32> -> vector<2x128xf32>
    %42 = arith.addf %40, %41 : vector<2x128xf32>
    %43 = math.tanh %42 : vector<2x128xf32>
    %44 = arith.truncf %43 : vector<2x128xf32> to vector<2x128xbf16>
    %45 = tpu.concatenate %44, %38 in 1 : vector<2x128xbf16>, vector<2x128xbf16> -> vector<2x256xbf16>
    %cst_24 = arith.constant dense<0.000000e+00> : vector<2x128xf32>
    %46 = tpu.matmul %45, %2, %cst_24 {dimension_numbers = #tpu.dot_dimension_numbers<[1], [0], [0], [1], [0, 0, 1, 1], [], []>} : vector<2x256xbf16>, vector<256x128xbf16>, vector<2x128xf32> -> vector<2x128xf32>
    %47 = vector.broadcast %4 : vector<1x128xf32> to vector<2x128xf32>
    %48 = arith.addf %46, %47 : vector<2x128xf32>
    %49 = math.tanh %48 : vector<2x128xf32>
    %50 = arith.truncf %49 : vector<2x128xf32> to vector<2x128xbf16>
    %c4 = arith.constant 4 : index
    %c0_25 = arith.constant 0 : index
    %51 = vector.load %arg6[%c4, %c0_25] : memref<16x128xf32, #tpu.memory_space<vmem>>, vector<2x128xf32>
    tpu.vector_store %arg6[%c4, %c0_25], %49 {strides = array<i32>} : memref<16x128xf32, #tpu.memory_space<vmem>>, vector<2x128xf32>,
    %52 = vector.extract_strided_slice %9 {offsets = [6, 0], sizes = [2, 128], strides = [1, 1]} : vector<16x128xf32> to vector<2x128xf32>
    %cst_26 = arith.constant dense<0.000000e+00> : vector<2x128xf32>
    %53 = tpu.matmul %44, %1, %cst_26 {dimension_numbers = #tpu.dot_dimension_numbers<[1], [0], [0], [1], [0, 0, 1, 1], [], []>} : vector<2x128xbf16>, vector<128x128xbf16>, vector<2x128xf32> -> vector<2x128xf32>
    %54 = arith.addf %52, %53 : vector<2x128xf32>
    %55 = math.tanh %54 : vector<2x128xf32>
    %56 = arith.truncf %55 : vector<2x128xf32> to vector<2x128xbf16>
    %57 = tpu.concatenate %56, %50 in 1 : vector<2x128xbf16>, vector<2x128xbf16> -> vector<2x256xbf16>
    %cst_27 = arith.constant dense<0.000000e+00> : vector<2x128xf32>
    %58 = tpu.matmul %57, %2, %cst_27 {dimension_numbers = #tpu.dot_dimension_numbers<[1], [0], [0], [1], [0, 0, 1, 1], [], []>} : vector<2x256xbf16>, vector<256x128xbf16>, vector<2x128xf32> -> vector<2x128xf32>
    %59 = vector.broadcast %4 : vector<1x128xf32> to vector<2x128xf32>
    %60 = arith.addf %58, %59 : vector<2x128xf32>
    %61 = math.tanh %60 : vector<2x128xf32>
    %62 = arith.truncf %61 : vector<2x128xf32> to vector<2x128xbf16>
    %c6 = arith.constant 6 : index
    %c0_28 = arith.constant 0 : index
    %63 = vector.load %arg6[%c6, %c0_28] : memref<16x128xf32, #tpu.memory_space<vmem>>, vector<2x128xf32>
    tpu.vector_store %arg6[%c6, %c0_28], %61 {strides = array<i32>} : memref<16x128xf32, #tpu.memory_space<vmem>>, vector<2x128xf32>,
    %64 = vector.extract_strided_slice %9 {offsets = [8, 0], sizes = [2, 128], strides = [1, 1]} : vector<16x128xf32> to vector<2x128xf32>
    %cst_29 = arith.constant dense<0.000000e+00> : vector<2x128xf32>
    %65 = tpu.matmul %56, %1, %cst_29 {dimension_numbers = #tpu.dot_dimension_numbers<[1], [0], [0], [1], [0, 0, 1, 1], [], []>} : vector<2x128xbf16>, vector<128x128xbf16>, vector<2x128xf32> -> vector<2x128xf32>
    %66 = arith.addf %64, %65 : vector<2x128xf32>
    %67 = math.tanh %66 : vector<2x128xf32>
    %68 = arith.truncf %67 : vector<2x128xf32> to vector<2x128xbf16>
    %69 = tpu.concatenate %68, %62 in 1 : vector<2x128xbf16>, vector<2x128xbf16> -> vector<2x256xbf16>
    %cst_30 = arith.constant dense<0.000000e+00> : vector<2x128xf32>
    %70 = tpu.matmul %69, %2, %cst_30 {dimension_numbers = #tpu.dot_dimension_numbers<[1], [0], [0], [1], [0, 0, 1, 1], [], []>} : vector<2x256xbf16>, vector<256x128xbf16>, vector<2x128xf32> -> vector<2x128xf32>
    %71 = vector.broadcast %4 : vector<1x128xf32> to vector<2x128xf32>
    %72 = arith.addf %70, %71 : vector<2x128xf32>
    %73 = math.tanh %72 : vector<2x128xf32>
    %74 = arith.truncf %73 : vector<2x128xf32> to vector<2x128xbf16>
    %c8 = arith.constant 8 : index
    %c0_31 = arith.constant 0 : index
    %75 = vector.load %arg6[%c8, %c0_31] : memref<16x128xf32, #tpu.memory_space<vmem>>, vector<2x128xf32>
    tpu.vector_store %arg6[%c8, %c0_31], %73 {strides = array<i32>} : memref<16x128xf32, #tpu.memory_space<vmem>>, vector<2x128xf32>,
    %76 = vector.extract_strided_slice %9 {offsets = [10, 0], sizes = [2, 128], strides = [1, 1]} : vector<16x128xf32> to vector<2x128xf32>
    %cst_32 = arith.constant dense<0.000000e+00> : vector<2x128xf32>
    %77 = tpu.matmul %68, %1, %cst_32 {dimension_numbers = #tpu.dot_dimension_numbers<[1], [0], [0], [1], [0, 0, 1, 1], [], []>} : vector<2x128xbf16>, vector<128x128xbf16>, vector<2x128xf32> -> vector<2x128xf32>
    %78 = arith.addf %76, %77 : vector<2x128xf32>
    %79 = math.tanh %78 : vector<2x128xf32>
    %80 = arith.truncf %79 : vector<2x128xf32> to vector<2x128xbf16>
    %81 = tpu.concatenate %80, %74 in 1 : vector<2x128xbf16>, vector<2x128xbf16> -> vector<2x256xbf16>
    %cst_33 = arith.constant dense<0.000000e+00> : vector<2x128xf32>
    %82 = tpu.matmul %81, %2, %cst_33 {dimension_numbers = #tpu.dot_dimension_numbers<[1], [0], [0], [1], [0, 0, 1, 1], [], []>} : vector<2x256xbf16>, vector<256x128xbf16>, vector<2x128xf32> -> vector<2x128xf32>
    %83 = vector.broadcast %4 : vector<1x128xf32> to vector<2x128xf32>
    %84 = arith.addf %82, %83 : vector<2x128xf32>
    %85 = math.tanh %84 : vector<2x128xf32>
    %86 = arith.truncf %85 : vector<2x128xf32> to vector<2x128xbf16>
    %c10 = arith.constant 10 : index
    %c0_34 = arith.constant 0 : index
    %87 = vector.load %arg6[%c10, %c0_34] : memref<16x128xf32, #tpu.memory_space<vmem>>, vector<2x128xf32>
    tpu.vector_store %arg6[%c10, %c0_34], %85 {strides = array<i32>} : memref<16x128xf32, #tpu.memory_space<vmem>>, vector<2x128xf32>,
    %88 = vector.extract_strided_slice %9 {offsets = [12, 0], sizes = [2, 128], strides = [1, 1]} : vector<16x128xf32> to vector<2x128xf32>
    %cst_35 = arith.constant dense<0.000000e+00> : vector<2x128xf32>
    %89 = tpu.matmul %80, %1, %cst_35 {dimension_numbers = #tpu.dot_dimension_numbers<[1], [0], [0], [1], [0, 0, 1, 1], [], []>} : vector<2x128xbf16>, vector<128x128xbf16>, vector<2x128xf32> -> vector<2x128xf32>
    %90 = arith.addf %88, %89 : vector<2x128xf32>
    %91 = math.tanh %90 : vector<2x128xf32>
    %92 = arith.truncf %91 : vector<2x128xf32> to vector<2x128xbf16>
    %93 = tpu.concatenate %92, %86 in 1 : vector<2x128xbf16>, vector<2x128xbf16> -> vector<2x256xbf16>
    %cst_36 = arith.constant dense<0.000000e+00> : vector<2x128xf32>
    %94 = tpu.matmul %93, %2, %cst_36 {dimension_numbers = #tpu.dot_dimension_numbers<[1], [0], [0], [1], [0, 0, 1, 1], [], []>} : vector<2x256xbf16>, vector<256x128xbf16>, vector<2x128xf32> -> vector<2x128xf32>
    %95 = vector.broadcast %4 : vector<1x128xf32> to vector<2x128xf32>
    %96 = arith.addf %94, %95 : vector<2x128xf32>
    %97 = math.tanh %96 : vector<2x128xf32>
    %98 = arith.truncf %97 : vector<2x128xf32> to vector<2x128xbf16>
    %c12 = arith.constant 12 : index
    %c0_37 = arith.constant 0 : index
    %99 = vector.load %arg6[%c12, %c0_37] : memref<16x128xf32, #tpu.memory_space<vmem>>, vector<2x128xf32>
    tpu.vector_store %arg6[%c12, %c0_37], %97 {strides = array<i32>} : memref<16x128xf32, #tpu.memory_space<vmem>>, vector<2x128xf32>,
    %100 = vector.extract_strided_slice %9 {offsets = [14, 0], sizes = [2, 128], strides = [1, 1]} : vector<16x128xf32> to vector<2x128xf32>
    %cst_38 = arith.constant dense<0.000000e+00> : vector<2x128xf32>
    %101 = tpu.matmul %92, %1, %cst_38 {dimension_numbers = #tpu.dot_dimension_numbers<[1], [0], [0], [1], [0, 0, 1, 1], [], []>} : vector<2x128xbf16>, vector<128x128xbf16>, vector<2x128xf32> -> vector<2x128xf32>
    %102 = arith.addf %100, %101 : vector<2x128xf32>
    %103 = math.tanh %102 : vector<2x128xf32>
    %104 = arith.truncf %103 : vector<2x128xf32> to vector<2x128xbf16>
    %105 = tpu.concatenate %104, %98 in 1 : vector<2x128xbf16>, vector<2x128xbf16> -> vector<2x256xbf16>
    %cst_39 = arith.constant dense<0.000000e+00> : vector<2x128xf32>
    %106 = tpu.matmul %105, %2, %cst_39 {dimension_numbers = #tpu.dot_dimension_numbers<[1], [0], [0], [1], [0, 0, 1, 1], [], []>} : vector<2x256xbf16>, vector<256x128xbf16>, vector<2x128xf32> -> vector<2x128xf32>
    %107 = vector.broadcast %4 : vector<1x128xf32> to vector<2x128xf32>
    %108 = arith.addf %106, %107 : vector<2x128xf32>
    %109 = math.tanh %108 : vector<2x128xf32>
    %c14 = arith.constant 14 : index
    %c0_40 = arith.constant 0 : index
    %110 = vector.load %arg6[%c14, %c0_40] : memref<16x128xf32, #tpu.memory_space<vmem>>, vector<2x128xf32>
    tpu.vector_store %arg6[%c14, %c0_40], %109 {strides = array<i32>} : memref<16x128xf32, #tpu.memory_space<vmem>>, vector<2x128xf32>,
    %c400 = arith.constant 400 : index
    %c0_41 = arith.constant 0 : index
    %111 = vector.load %arg2[%c400, %c0_41] : memref<528x128xbf16, #tpu.memory_space<vmem>>, vector<128x128xbf16>
    %c0_42 = arith.constant 0 : index
    %c0_43 = arith.constant 0 : index
    %112 = vector.load %arg6[%c0_42, %c0_43] : memref<16x128xf32, #tpu.memory_space<vmem>>, vector<16x128xf32>
    %113 = arith.truncf %112 : vector<16x128xf32> to vector<16x128xbf16>
    %cst_44 = arith.constant dense<0.000000e+00> : vector<16x128xf32>
    %114 = tpu.matmul %113, %111, %cst_44 {dimension_numbers = #tpu.dot_dimension_numbers<[1], [0], [0], [1], [0, 0, 1, 1], [], []>} : vector<16x128xbf16>, vector<128x128xbf16>, vector<16x128xf32> -> vector<16x128xf32>
    %115 = vector.broadcast %5 : vector<1x128xf32> to vector<16x128xf32>
    %116 = arith.addf %114, %115 : vector<16x128xf32>
    %c0_45 = arith.constant 0 : index
    %c0_46 = arith.constant 0 : index
    %117 = vector.load %arg4[%c0_45, %c0_46] : memref<16x128xf32, #tpu.memory_space<vmem>>, vector<16x128xf32>
    tpu.vector_store %arg4[%c0_45, %c0_46], %116 {strides = array<i32>} : memref<16x128xf32, #tpu.memory_space<vmem>>, vector<16x128xf32>,
    %c0_47 = arith.constant 0 : index
    %c0_48 = arith.constant 0 : index
    %c0_49 = arith.constant 0 : index
    %118 = vector.load %arg5[%c0_47, %c0_48, %c0_49] : memref<2x2x128xf32, #tpu.memory_space<vmem>>, vector<1x2x128xf32>
    %119 = vector.shape_cast %118 : vector<1x2x128xf32> to vector<2x128xf32>
    %120 = vector.shape_cast %103 : vector<2x128xf32> to vector<1x2x128xf32>
    tpu.vector_store %arg5[%c0_47, %c0_48, %c0_49], %120 {strides = array<i32>} : memref<2x2x128xf32, #tpu.memory_space<vmem>>, vector<1x2x128xf32>,
    %c1_50 = arith.constant 1 : index
    %c0_51 = arith.constant 0 : index
    %c0_52 = arith.constant 0 : index
    %121 = vector.load %arg5[%c1_50, %c0_51, %c0_52] : memref<2x2x128xf32, #tpu.memory_space<vmem>>, vector<1x2x128xf32>
    %122 = vector.shape_cast %121 : vector<1x2x128xf32> to vector<2x128xf32>
    %123 = vector.shape_cast %109 : vector<2x128xf32> to vector<1x2x128xf32>
    tpu.vector_store %arg5[%c1_50, %c0_51, %c0_52], %123 {strides = array<i32>} : memref<2x2x128xf32, #tpu.memory_space<vmem>>, vector<1x2x128xf32>,
    return
  }
}

</mosaic_0001>

<bundles_post_ra>
// kernel: word_rnn_forward.1
= control target key start
LH: loop header
LB: loop body
LE: loop exit
PB: predicated region body
PF: predicated region fallthrough
CT: control target
= control target key end

     0   :  { %11 = vsyncpa [#allocation4], 0  ;;  %s1761_s18 = smov [#allocation3]   ;;  %s2193_s0 = inlined_call_operand.vmem [shape: bf16[16,16], index: 0, kind: input, shape index: {}]   ;;  %s2194_s1 = inlined_call_operand.vmem [shape: f32[2,2,128], index: 1, kind: input, shape index: {}, may-alias: {1,5}]   ;;  %s2195_s2 = inlined_call_operand.hbm [shape: bf16[528,128], index: 2, kind: input, shape index: {}]   ;;  %s2196_s3 = inlined_call_operand.vmem [shape: f32[8,128], index: 3, kind: input, shape index: {}]   ;;  %s2197_s4 = inlined_call_operand.vmem [shape: f32[16,128], index: 4, kind: output, shape index: {0}]   ;;  %s2198_s5 = inlined_call_operand.vmem [shape: f32[2,2,128], index: 5, kind: output, shape index: {1}, may-alias: {1,5}]  }
   0x1   :  { %s21_s19 = sshll.u32 %s1761_s18, 4  ;;  %s1737_s22 = scalar_lea.hbm %s2195_s2, 4224  ;;  %s22_s19 = int_to_ptr.vmem [resolvable:$true] %s21_s19 }
   0x2   :  { %p1738_p0 = scmp.ne.s32.totalorder %s2195_s2, %s1737_s22  ;;  %p1741_p1 = scmp.lt.u32.totalorder %s1737_s22, %s2195_s2 }
   0x4   :  { %p1743_p2 = pnand %p1741_p1, %p1738_p0 }
   0x6   :  { %1746 = shalt.err (!%p1743_p2)
}
   0x7   :  { %s1747_s27 = scalar_lea.vmem %s22_s19, 4224  ;;  %p1752_p4 = scmp.lt.s32.totalorder %s22_s19, %s22_s19 }
   0x8   :  { %p1748_p3 = scmp.ne.s32.totalorder %s22_s19, %s1747_s27  ;;  %p1753_p5 = scmp.lt.s32.totalorder %s1747_s27, %s1747_s27 }
   0xa   :  { %p1754_p6 = por %p1753_p5, %p1752_p4 }
   0xc   :  { %p1755_p7 = pnand %p1754_p6, %p1748_p3 }
   0xe   :  { %1758 = shalt.err (!%p1755_p7)
}
   0xf   :  { %s1762_s28 = smov 64   ;;  %s1763_s29 = smov 4  }
  0x10   :  { %27 = dma.hbm_to_vmem [thread:$0]  %s2195_s2, 4224, %s22_s19, [#allocation4], %s1762_s28, %s1762_s28, %s1763_s29  }
  0x11   :  { %1759 = dma.done.wait [#allocation4], 4224  }
  0x12   :  { %1760 = vsyncadd [#allocation4], 4294963072  ;;  %v1764_v0 = vmov 0.0   ;;  %vm1765_vm0 = vmmov 0   ;;  %v1814_v1 = vld [vmem:[#allocation3 + $0x8] sm:$0xff]   ;;  %v1817_v2 = vld [vmem:[#allocation3 + $0x10] sm:$0xff]  }
  0x13   :  { %1486 = vmatprep.subr.bf16.mxu1 %v1764_v0  ;;  %1480 = vmatprep.subr.bf16.mxu0 %v1764_v0  ;;  %v1820_v3 = vld [vmem:[#allocation3 + $0x18] sm:$0xff]   ;;  %v1677_v4 = vld [vmem:[#allocation3] sm:$0xff]   ;;  %v1679_v5 = vld [vmem:[%s2193_s0] sm:$0xff]   ;;  %vm104_vm1 = vcmask 130048  }
  0x14   :  { %1482 = vmatprep.mubr.msk.bf16.mxu0 %vm1765_vm0, %v1764_v0  ;;  %1502 = vmatprep.mubr.msk.bf16.mxu1 %vm1765_vm0, %v1764_v0  ;;  %v1828_v6 = vld [vmem:[#allocation3 + $0x20] sm:$0xff]   ;;  %v1831_v7 = vld [vmem:[#allocation3 + $0x88] sm:$0xff]   ;;  %v1838_v10 = vld [vmem:[#allocation3 + $0x90] sm:$0xff]  }
  0x15   :  { %1487 = vmatpush3.bf16.msra.mxu1 %v1814_v1  ;;  %1481 = vmatpush3.bf16.msra.mxu0 %v1677_v4  ;;  %v1833_v8 = vld [vmem:[#allocation3 + $0x28] sm:$0xff]   ;;  %v1842_v11 = vld [vmem:[#allocation3 + $0x50] sm:$0xff]   ;;  %v1846_v12 = vld [vmem:[#allocation3 + $0x98] sm:$0xff]  }
  0x16   :  { %1488 = vmatprep.subr.bf16.mxu1 %v1764_v0  ;;  %v1835_v9 = vld [vmem:[#allocation3 + $0x48] sm:$0xff]   ;;  %1232 = vmatprep.subr.bf16.mxu0 %v1831_v7  ;;  %v1848_v13 = vld [vmem:[#allocation3 + $0x30] sm:$0xff]   ;;  %v1850_v14 = vld [vmem:[#allocation3 + $0x58] sm:$0xff]  }
  0x17   :  { %v1856_v15 = vld [vmem:[#allocation3 + $0x38] sm:$0xff]   ;;  %v1861_v16 = vld [vmem:[#allocation3 + $0x40] sm:$0xff]   ;;  %v149_v17 = vld [vmem:[%s2194_s1] sm:$0x3] }
  0x18   :  { %1483 = vmatmul.mubr.msk.bf16.vlgmr.msra.gmra.mrb[0].mxu0 %vm104_vm1, %v1679_v5  ;;  %v152_v18 = vpack.c.bf16 %v149_v17, %v149_v17  ;;  %v1888_v19 = vld [vmem:[#allocation3 + $0xa0] sm:$0xff]   ;;  %v1894_v21 = vld [vmem:[#allocation3 + $0xa8] sm:$0xff]   ;;  %v1900_v23 = vld [vmem:[#allocation3 + $0xb0] sm:$0xff]  }
  0x19   :  { %1489 = vmatpush3.bf16.msra.mxu1 %v1817_v2  ;;  %1233 = vmatpush3.bf16.msra.mxu0 %v1835_v9  ;;  %v1891_v20 = vld [vmem:[#allocation3 + $0x60] sm:$0xff]   ;;  %v1896_v22 = vld [vmem:[#allocation3 + $0x68] sm:$0xff]   ;;  %v1902_v24 = vld [vmem:[#allocation3 + $0x70] sm:$0xff]  }
  0x1a   :  { %1490 = vmatprep.subr.bf16.mxu1 %v1764_v0  ;;  %1234 = vmatprep.subr.bf16.mxu0 %v1838_v10  ;;  %v1906_v25 = vld [vmem:[#allocation3 + $0xb8] sm:$0xff]   ;;  %v1912_v27 = vld [vmem:[#allocation3 + $0xc0] sm:$0xff]   ;;  %v1179_v29 = vld [vmem:[%s2194_s1 + $0x2] sm:$0x3] }
  0x1b   :  { %v1908_v26 = vld [vmem:[#allocation3 + $0x78] sm:$0xff]   ;;  %v1914_v28 = vld [vmem:[#allocation3 + $0x80] sm:$0xff]   ;;  %v153_v30 = vpack.c.bf16 %v1179_v29, %v1179_v29  ;;  %v1175_v31 = vld [vmem:[%s2196_s3] ss:$0 sm:$0xff] }
  0x1c   :  { %v1967_v48 = vld [vmem:[%s2196_s3 + $0x1] ss:$0 sm:$0xff] }
  0x1d   :  { %1491 = vmatpush3.bf16.msra.mxu1 %v1820_v3  ;;  %1235 = vmatpush3.bf16.msra.mxu0 %v1842_v11 }
  0x1e   :  { %1492 = vmatprep.subr.bf16.mxu1 %v1764_v0  ;;  %1236 = vmatprep.subr.bf16.mxu0 %v1846_v12 }
  0x1f   :  { %377 = vmatprep.mubr.bf16.mxu0 %v153_v30 }
  0x21   :  { %1493 = vmatpush3.bf16.msra.mxu1 %v1828_v6  ;;  %1237 = vmatpush3.bf16.msra.mxu0 %v1850_v14 }
  0x22   :  { %1494 = vmatprep.subr.bf16.mxu1 %v1764_v0  ;;  %1238 = vmatprep.subr.bf16.mxu0 %v1888_v19 }
  0x25   :  { %1495 = vmatpush3.bf16.msra.mxu1 %v1833_v8  ;;  %1239 = vmatpush3.bf16.msra.mxu0 %v1891_v20 }
  0x26   :  { %1496 = vmatprep.subr.bf16.mxu1 %v1764_v0  ;;  %1240 = vmatprep.subr.bf16.mxu0 %v1894_v21 }
  0x29   :  { %1497 = vmatpush3.bf16.msra.mxu1 %v1848_v13  ;;  %1241 = vmatpush3.bf16.msra.mxu0 %v1896_v22 }
  0x2a   :  { %1498 = vmatprep.subr.bf16.mxu1 %v1764_v0  ;;  %1242 = vmatprep.subr.bf16.mxu0 %v1900_v23 }
  0x2d   :  { %1499 = vmatpush3.bf16.msra.mxu1 %v1856_v15  ;;  %1243 = vmatpush3.bf16.msra.mxu0 %v1902_v24 }
  0x2e   :  { %1500 = vmatprep.subr.bf16.mxu1 %v1764_v0  ;;  %1244 = vmatprep.subr.bf16.mxu0 %v1906_v25 }
  0x31   :  { %1501 = vmatpush3.bf16.msra.mxu1 %v1861_v16  ;;  %1245 = vmatpush3.bf16.msra.mxu0 %v1908_v26 }
  0x32   :  { %1506 = vmatprep.subr.bf16.mxu1 %v1764_v0  ;;  %1246 = vmatprep.subr.bf16.mxu0 %v1912_v27 }
  0x34   :  { %1503 = vmatmul.mubr.bf16.vlgmr.msra.gmra.mrb[0].mxu1 %v152_v18 }
  0x35   :  { %1507 = vmatpush3.bf16.msra.mxu1 %v1814_v1  ;;  %1522 = vmatprep.mubr.msk.bf16.mxu1 %vm1765_vm0, %v1764_v0 }
  0x36   :  { %1508 = vmatprep.subr.bf16.mxu1 %v1764_v0  ;;  %1247 = vmatpush3.bf16.msra.mxu0 %v1914_v28 }
  0x37   :  { %1263 = vmatprep.subr.bf16.mxu0 %v1831_v7 }
  0x39   :  { %1509 = vmatpush3.bf16.msra.mxu1 %v1817_v2 }
  0x3a   :  { %1510 = vmatprep.subr.bf16.mxu1 %v1764_v0 }
  0x3d   :  { %1511 = vmatpush3.bf16.msra.mxu1 %v1820_v3 }
  0x3e   :  { %1512 = vmatprep.subr.bf16.mxu1 %v1764_v0 }
  0x41   :  { %1513 = vmatpush3.bf16.msra.mxu1 %v1828_v6 }
  0x42   :  { %1514 = vmatprep.subr.bf16.mxu1 %v1764_v0 }
  0x45   :  { %1515 = vmatpush3.bf16.msra.mxu1 %v1833_v8 }
  0x46   :  { %1516 = vmatprep.subr.bf16.mxu1 %v1764_v0 }
  0x49   :  { %1517 = vmatpush3.bf16.msra.mxu1 %v1848_v13 }
  0x4a   :  { %1518 = vmatprep.subr.bf16.mxu1 %v1764_v0 }
  0x4d   :  { %1519 = vmatpush3.bf16.msra.mxu1 %v1856_v15 }
  0x4e   :  { %1520 = vmatprep.subr.bf16.mxu1 %v1764_v0 }
  0x51   :  { %1521 = vmatpush3.bf16.msra.mxu1 %v1861_v16 }
  0x52   :  { %1526 = vmatprep.subr.bf16.mxu1 %v1764_v0 }
  0xeb   :  { %v142_v32 = vpop.f32.mrb[0].mxu0 }
  0xec   :  { %v1484_v33 = vpop.f32.mrb[1].mxu0  ;;  %v1927_v37 = vadd.f32 %v1175_v31, %v142_v32 }
  0xed   :  { %v145_v34 = vpop.f32.mrb[2].mxu0 }
  0xee   :  { %v1925_v35 = vadd.f32 %v1175_v31, %v145_v34  ;;  %v1485_v36 = vpop.f32.mrb[3].mxu0 }
 0x107   :  { %v236_v38 = vpop.f32.mrb[0].mxu1 }
 0x108   :  { %v242_v39 = vadd.f32 %v236_v38, %v1927_v37  ;;  %v1504_v40 = vpop.f32.mrb[1].mxu1 }
 0x109   :  { %v239_v41 = vpop.f32.mrb[2].mxu1 }
 0x10a   :  { %1705 = vtanh.f32 %v242_v39  ;;  %v1505_v42 = vpop.f32.mrb[3].mxu1 }
 0x114   :  { %v1706_v43 = vpop.eup %1705 }
 0x115   :  { %v244_v44 = vpack.c.bf16 %v1706_v43, %v1706_v43 }
 0x117   :  { %378 = vmatmul.mubr.bf16.vlgmr.msra.gmra.mrb[4].mxu0 %v244_v44  ;;  %1523 = vmatmul.mubr.bf16.vlgmr.msra.gmra.mrb[4].mxu1 %v244_v44 }
 0x118   :  { %1264 = vmatpush3.bf16.msra.mxu0 %v1835_v9  ;;  %1527 = vmatpush3.bf16.msra.mxu1 %v1814_v1 }
 0x119   :  { %1265 = vmatprep.subr.bf16.mxu0 %v1838_v10  ;;  %1528 = vmatprep.subr.bf16.mxu1 %v1764_v0 }
 0x11a   :  { %1542 = vmatprep.mubr.msk.bf16.mxu1 %vm1765_vm0, %v1764_v0 }
 0x11c   :  { %1266 = vmatpush3.bf16.msra.mxu0 %v1842_v11  ;;  %1529 = vmatpush3.bf16.msra.mxu1 %v1817_v2 }
 0x11d   :  { %1267 = vmatprep.subr.bf16.mxu0 %v1846_v12  ;;  %1530 = vmatprep.subr.bf16.mxu1 %v1764_v0 }
 0x120   :  { %1268 = vmatpush3.bf16.msra.mxu0 %v1850_v14  ;;  %1531 = vmatpush3.bf16.msra.mxu1 %v1820_v3 }
 0x121   :  { %1269 = vmatprep.subr.bf16.mxu0 %v1888_v19  ;;  %1532 = vmatprep.subr.bf16.mxu1 %v1764_v0 }
 0x124   :  { %1270 = vmatpush3.bf16.msra.mxu0 %v1891_v20  ;;  %1533 = vmatpush3.bf16.msra.mxu1 %v1828_v6 }
 0x125   :  { %1271 = vmatprep.subr.bf16.mxu0 %v1894_v21  ;;  %1534 = vmatprep.subr.bf16.mxu1 %v1764_v0 }
 0x128   :  { %1272 = vmatpush3.bf16.msra.mxu0 %v1896_v22  ;;  %1535 = vmatpush3.bf16.msra.mxu1 %v1833_v8 }
 0x129   :  { %1273 = vmatprep.subr.bf16.mxu0 %v1900_v23  ;;  %1536 = vmatprep.subr.bf16.mxu1 %v1764_v0 }
 0x12c   :  { %1274 = vmatpush3.bf16.msra.mxu0 %v1902_v24  ;;  %1537 = vmatpush3.bf16.msra.mxu1 %v1848_v13 }
 0x12d   :  { %1275 = vmatprep.subr.bf16.mxu0 %v1906_v25  ;;  %1538 = vmatprep.subr.bf16.mxu1 %v1764_v0 }
 0x130   :  { %1276 = vmatpush3.bf16.msra.mxu0 %v1908_v26  ;;  %1539 = vmatpush3.bf16.msra.mxu1 %v1856_v15 }
 0x131   :  { %1277 = vmatprep.subr.bf16.mxu0 %v1912_v27  ;;  %1540 = vmatprep.subr.bf16.mxu1 %v1764_v0 }
 0x134   :  { %1278 = vmatpush3.bf16.msra.mxu0 %v1914_v28  ;;  %1541 = vmatpush3.bf16.msra.mxu1 %v1861_v16 }
 0x135   :  { %1294 = vmatprep.subr.bf16.mxu0 %v1831_v7  ;;  %1546 = vmatprep.subr.bf16.mxu1 %v1764_v0 }
 0x1ea   :  { %v1248_v45 = vpop.f32.mrb[4].mxu0  ;;  %v422_v46 = vpop.f32.mrb[4].mxu1 }
 0x1eb   :  { %v429_v47 = vrot.slane %v422_v46, 6  ;;  %v1249_v49 = vpop.f32.mrb[5].mxu0  ;;  %v1524_v50 = vpop.f32.mrb[5].mxu1 }
 0x1ec   :  { %v1250_v51 = vadd.f32 %v1249_v49, %v1248_v45  ;;  %v1251_v52 = vpop.f32.mrb[6].mxu0  ;;  %v425_v53 = vpop.f32.mrb[6].mxu1 }
 0x1ed   :  { %v431_v54 = vadd.f32 %v429_v47, %v1927_v37  ;;  %v1252_v55 = vpop.f32.mrb[7].mxu0  ;;  %v1525_v56 = vpop.f32.mrb[7].mxu1 }
 0x1ee   :  { %v380_v57 = vadd.f32 %v1250_v51, %v1967_v48 }
 0x1ef   :  { %1707 = vtanh.f32 %v431_v54 }
 0x1f0   :  { %1709 = vtanh.f32 %v380_v57 }
 0x1f9   :  { %v1708_v58 = vpop.eup %1707 }
 0x1fa   :  { %v1710_v59 = vpop.eup %1709  ;;  %v433_v60 = vpack.c.bf16 %v1708_v58, %v1708_v58 }
 0x1fb   :  { %387 = vst [vmem:[#allocation2] sm:$0x3] %v1710_v59  ;;  %v386_v61 = vpack.c.bf16 %v1710_v59, %v1710_v59 }
 0x1fc   :  { %v437_v62 = vrot.slane %v433_v60, 1 }
 0x1fd   :  { %473 = vmatprep.mubr.bf16.mxu0 %v386_v61 }
 0x1fe   :  { %474 = vmatmul.mubr.bf16.vlgmr.msra.gmra.mrb[8].mxu0 %v437_v62  ;;  %1543 = vmatmul.mubr.bf16.vlgmr.msra.gmra.mrb[8].mxu1 %v437_v62 }
 0x1ff   :  { %1295 = vmatpush3.bf16.msra.mxu0 %v1835_v9  ;;  %1547 = vmatpush3.bf16.msra.mxu1 %v1814_v1 }
 0x200   :  { %1296 = vmatprep.subr.bf16.mxu0 %v1838_v10  ;;  %1548 = vmatprep.subr.bf16.mxu1 %v1764_v0 }
 0x201   :  { %1562 = vmatprep.mubr.msk.bf16.mxu1 %vm1765_vm0, %v1764_v0 }
 0x203   :  { %1297 = vmatpush3.bf16.msra.mxu0 %v1842_v11  ;;  %1549 = vmatpush3.bf16.msra.mxu1 %v1817_v2 }
 0x204   :  { %1298 = vmatprep.subr.bf16.mxu0 %v1846_v12  ;;  %1550 = vmatprep.subr.bf16.mxu1 %v1764_v0 }
 0x207   :  { %1299 = vmatpush3.bf16.msra.mxu0 %v1850_v14  ;;  %1551 = vmatpush3.bf16.msra.mxu1 %v1820_v3 }
 0x208   :  { %1300 = vmatprep.subr.bf16.mxu0 %v1888_v19  ;;  %1552 = vmatprep.subr.bf16.mxu1 %v1764_v0 }
 0x20b   :  { %1301 = vmatpush3.bf16.msra.mxu0 %v1891_v20  ;;  %1553 = vmatpush3.bf16.msra.mxu1 %v1828_v6 }
 0x20c   :  { %1302 = vmatprep.subr.bf16.mxu0 %v1894_v21  ;;  %1554 = vmatprep.subr.bf16.mxu1 %v1764_v0 }
 0x20f   :  { %1303 = vmatpush3.bf16.msra.mxu0 %v1896_v22  ;;  %1555 = vmatpush3.bf16.msra.mxu1 %v1833_v8 }
 0x210   :  { %1304 = vmatprep.subr.bf16.mxu0 %v1900_v23  ;;  %1556 = vmatprep.subr.bf16.mxu1 %v1764_v0 }
 0x213   :  { %1305 = vmatpush3.bf16.msra.mxu0 %v1902_v24  ;;  %1557 = vmatpush3.bf16.msra.mxu1 %v1848_v13 }
 0x214   :  { %1306 = vmatprep.subr.bf16.mxu0 %v1906_v25  ;;  %1558 = vmatprep.subr.bf16.mxu1 %v1764_v0 }
 0x217   :  { %1307 = vmatpush3.bf16.msra.mxu0 %v1908_v26  ;;  %1559 = vmatpush3.bf16.msra.mxu1 %v1856_v15 }
 0x218   :  { %1308 = vmatprep.subr.bf16.mxu0 %v1912_v27  ;;  %1560 = vmatprep.subr.bf16.mxu1 %v1764_v0 }
 0x21b   :  { %1309 = vmatpush3.bf16.msra.mxu0 %v1914_v28  ;;  %1561 = vmatpush3.bf16.msra.mxu1 %v1861_v16 }
 0x21c   :  { %1325 = vmatprep.subr.bf16.mxu0 %v1831_v7  ;;  %1566 = vmatprep.subr.bf16.mxu1 %v1764_v0 }
 0x2d1   :  { %v1279_v63 = vpop.f32.mrb[8].mxu0  ;;  %v518_v4 = vpop.f32.mrb[8].mxu1 }
 0x2d2   :  { %v525_v5 = vrot.slane %v518_v4, 4  ;;  %v1280_v17 = vpop.f32.mrb[9].mxu0  ;;  %v1544_v18 = vpop.f32.mrb[9].mxu1 }
 0x2d3   :  { %v1281_v29 = vadd.f32 %v1280_v17, %v1279_v63  ;;  %v1282_v30 = vpop.f32.mrb[10].mxu0  ;;  %v521_v31 = vpop.f32.mrb[10].mxu1 }
 0x2d4   :  { %v527_v32 = vadd.f32 %v525_v5, %v1927_v37  ;;  %v1283_v33 = vpop.f32.mrb[11].mxu0  ;;  %v1545_v34 = vpop.f32.mrb[11].mxu1 }
 0x2d5   :  { %v476_v36 = vadd.f32 %v1281_v29, %v1967_v48 }
 0x2d6   :  { %1711 = vtanh.f32 %v527_v32 }
 0x2d7   :  { %1713 = vtanh.f32 %v476_v36 }
 0x2e0   :  { %v1712_v38 = vpop.eup %1711 }
 0x2e1   :  { %v1714_v39 = vpop.eup %1713  ;;  %v529_v40 = vpack.c.bf16 %v1712_v38, %v1712_v38 }
 0x2e2   :  { %483 = vst [vmem:[#allocation2 + $0x2] sm:$0x3] %v1714_v39  ;;  %v482_v41 = vpack.c.bf16 %v1714_v39, %v1714_v39 }
 0x2e3   :  { %v533_v42 = vrot.slane %v529_v40, 2 }
 0x2e4   :  { %569 = vmatprep.mubr.bf16.mxu0 %v482_v41 }
 0x2e5   :  { %570 = vmatmul.mubr.bf16.vlgmr.msra.gmra.mrb[12].mxu0 %v533_v42  ;;  %1563 = vmatmul.mubr.bf16.vlgmr.msra.gmra.mrb[12].mxu1 %v533_v42 }
 0x2e6   :  { %1326 = vmatpush3.bf16.msra.mxu0 %v1835_v9  ;;  %1567 = vmatpush3.bf16.msra.mxu1 %v1814_v1 }
 0x2e7   :  { %1327 = vmatprep.subr.bf16.mxu0 %v1838_v10  ;;  %1568 = vmatprep.subr.bf16.mxu1 %v1764_v0 }
 0x2e8   :  { %1582 = vmatprep.mubr.msk.bf16.mxu1 %vm1765_vm0, %v1764_v0 }
 0x2ea   :  { %1328 = vmatpush3.bf16.msra.mxu0 %v1842_v11  ;;  %1569 = vmatpush3.bf16.msra.mxu1 %v1817_v2 }
 0x2eb   :  { %1329 = vmatprep.subr.bf16.mxu0 %v1846_v12  ;;  %1570 = vmatprep.subr.bf16.mxu1 %v1764_v0 }
 0x2ee   :  { %1330 = vmatpush3.bf16.msra.mxu0 %v1850_v14  ;;  %1571 = vmatpush3.bf16.msra.mxu1 %v1820_v3 }
 0x2ef   :  { %1331 = vmatprep.subr.bf16.mxu0 %v1888_v19  ;;  %1572 = vmatprep.subr.bf16.mxu1 %v1764_v0 }
 0x2f2   :  { %1332 = vmatpush3.bf16.msra.mxu0 %v1891_v20  ;;  %1573 = vmatpush3.bf16.msra.mxu1 %v1828_v6 }
 0x2f3   :  { %1333 = vmatprep.subr.bf16.mxu0 %v1894_v21  ;;  %1574 = vmatprep.subr.bf16.mxu1 %v1764_v0 }
 0x2f6   :  { %1334 = vmatpush3.bf16.msra.mxu0 %v1896_v22  ;;  %1575 = vmatpush3.bf16.msra.mxu1 %v1833_v8 }
 0x2f7   :  { %1335 = vmatprep.subr.bf16.mxu0 %v1900_v23  ;;  %1576 = vmatprep.subr.bf16.mxu1 %v1764_v0 }
 0x2fa   :  { %1336 = vmatpush3.bf16.msra.mxu0 %v1902_v24  ;;  %1577 = vmatpush3.bf16.msra.mxu1 %v1848_v13 }
 0x2fb   :  { %1337 = vmatprep.subr.bf16.mxu0 %v1906_v25  ;;  %1578 = vmatprep.subr.bf16.mxu1 %v1764_v0 }
 0x2fe   :  { %1338 = vmatpush3.bf16.msra.mxu0 %v1908_v26  ;;  %1579 = vmatpush3.bf16.msra.mxu1 %v1856_v15 }
 0x2ff   :  { %1339 = vmatprep.subr.bf16.mxu0 %v1912_v27  ;;  %1580 = vmatprep.subr.bf16.mxu1 %v1764_v0 }
 0x302   :  { %1340 = vmatpush3.bf16.msra.mxu0 %v1914_v28  ;;  %1581 = vmatpush3.bf16.msra.mxu1 %v1861_v16 }
 0x303   :  { %1586 = vmatprep.subr.bf16.mxu1 %v1764_v0  ;;  %1356 = vmatprep.subr.bf16.mxu0 %v1831_v7 }
 0x3b8   :  { %v1310_v43 = vpop.f32.mrb[12].mxu0  ;;  %v614_v44 = vpop.f32.mrb[12].mxu1 }
 0x3b9   :  { %v621_v45 = vrot.slane %v614_v44, 2  ;;  %v1311_v46 = vpop.f32.mrb[13].mxu0  ;;  %v1564_v47 = vpop.f32.mrb[13].mxu1 }
 0x3ba   :  { %v1312_v49 = vadd.f32 %v1311_v46, %v1310_v43  ;;  %v1313_v50 = vpop.f32.mrb[14].mxu0  ;;  %v617_v51 = vpop.f32.mrb[14].mxu1 }
 0x3bb   :  { %v623_v52 = vadd.f32 %v621_v45, %v1927_v37  ;;  %v1314_v53 = vpop.f32.mrb[15].mxu0  ;;  %v1565_v54 = vpop.f32.mrb[15].mxu1 }
 0x3bc   :  { %v572_v55 = vadd.f32 %v1312_v49, %v1967_v48 }
 0x3bd   :  { %1715 = vtanh.f32 %v623_v52 }
 0x3be   :  { %1717 = vtanh.f32 %v572_v55 }
 0x3c7   :  { %v1716_v56 = vpop.eup %1715 }
 0x3c8   :  { %v1718_v57 = vpop.eup %1717  ;;  %v625_v58 = vpack.c.bf16 %v1716_v56, %v1716_v56 }
 0x3c9   :  { %579 = vst [vmem:[#allocation2 + $0x4] sm:$0x3] %v1718_v57  ;;  %v578_v59 = vpack.c.bf16 %v1718_v57, %v1718_v57 }
 0x3ca   :  { %v629_v60 = vrot.slane %v625_v58, 3 }
 0x3cb   :  { %665 = vmatprep.mubr.bf16.mxu0 %v578_v59 }
 0x3cc   :  { %666 = vmatmul.mubr.bf16.vlgmr.msra.gmra.mrb[16].mxu0 %v629_v60  ;;  %1583 = vmatmul.mubr.bf16.vlgmr.msra.gmra.mrb[16].mxu1 %v629_v60 }
 0x3cd   :  { %1587 = vmatpush3.bf16.msra.mxu1 %v1814_v1  ;;  %1357 = vmatpush3.bf16.msra.mxu0 %v1835_v9 }
 0x3ce   :  { %1588 = vmatprep.subr.bf16.mxu1 %v1764_v0  ;;  %1358 = vmatprep.subr.bf16.mxu0 %v1838_v10 }
 0x3cf   :  { %1602 = vmatprep.mubr.msk.bf16.mxu1 %vm1765_vm0, %v1764_v0 }
 0x3d1   :  { %1589 = vmatpush3.bf16.msra.mxu1 %v1817_v2  ;;  %1359 = vmatpush3.bf16.msra.mxu0 %v1842_v11 }
 0x3d2   :  { %1590 = vmatprep.subr.bf16.mxu1 %v1764_v0  ;;  %1360 = vmatprep.subr.bf16.mxu0 %v1846_v12 }
 0x3d5   :  { %1591 = vmatpush3.bf16.msra.mxu1 %v1820_v3  ;;  %1361 = vmatpush3.bf16.msra.mxu0 %v1850_v14 }
 0x3d6   :  { %1592 = vmatprep.subr.bf16.mxu1 %v1764_v0  ;;  %1362 = vmatprep.subr.bf16.mxu0 %v1888_v19 }
 0x3d9   :  { %1593 = vmatpush3.bf16.msra.mxu1 %v1828_v6  ;;  %1363 = vmatpush3.bf16.msra.mxu0 %v1891_v20 }
 0x3da   :  { %1594 = vmatprep.subr.bf16.mxu1 %v1764_v0  ;;  %1364 = vmatprep.subr.bf16.mxu0 %v1894_v21 }
 0x3dd   :  { %1595 = vmatpush3.bf16.msra.mxu1 %v1833_v8  ;;  %1365 = vmatpush3.bf16.msra.mxu0 %v1896_v22 }
 0x3de   :  { %1596 = vmatprep.subr.bf16.mxu1 %v1764_v0  ;;  %1366 = vmatprep.subr.bf16.mxu0 %v1900_v23 }
 0x3e1   :  { %1597 = vmatpush3.bf16.msra.mxu1 %v1848_v13  ;;  %1367 = vmatpush3.bf16.msra.mxu0 %v1902_v24 }
 0x3e2   :  { %1598 = vmatprep.subr.bf16.mxu1 %v1764_v0  ;;  %1368 = vmatprep.subr.bf16.mxu0 %v1906_v25 }
 0x3e5   :  { %1599 = vmatpush3.bf16.msra.mxu1 %v1856_v15  ;;  %1369 = vmatpush3.bf16.msra.mxu0 %v1908_v26 }
 0x3e6   :  { %1600 = vmatprep.subr.bf16.mxu1 %v1764_v0  ;;  %1370 = vmatprep.subr.bf16.mxu0 %v1912_v27 }
 0x3e9   :  { %1601 = vmatpush3.bf16.msra.mxu1 %v1861_v16  ;;  %1371 = vmatpush3.bf16.msra.mxu0 %v1914_v28 }
 0x3ea   :  { %1606 = vmatprep.subr.bf16.mxu1 %v1764_v0  ;;  %1387 = vmatprep.subr.bf16.mxu0 %v1831_v7 }
 0x49f   :  { %v1341_v37 = vpop.f32.mrb[16].mxu0  ;;  %v710_v61 = vpop.f32.mrb[16].mxu1 }
 0x4a0   :  { %v716_v62 = vadd.f32 %v710_v61, %v1925_v35  ;;  %v1342_v63 = vpop.f32.mrb[17].mxu0  ;;  %v1584_v4 = vpop.f32.mrb[17].mxu1 }
 0x4a1   :  { %v1343_v5 = vadd.f32 %v1342_v63, %v1341_v37  ;;  %v1344_v17 = vpop.f32.mrb[18].mxu0  ;;  %v713_v18 = vpop.f32.mrb[18].mxu1 }
 0x4a2   :  { %1719 = vtanh.f32 %v716_v62  ;;  %v1345_v29 = vpop.f32.mrb[19].mxu0  ;;  %v1585_v30 = vpop.f32.mrb[19].mxu1  ;;  %v1699_v17 = vld [vmem:[#allocation3 + $0xd8] sm:$0xff]   ;;  %v1700_v18 = vld [vmem:[#allocation3 + $0xe0] sm:$0xff]  }
 0x4a3   :  { %v668_v31 = vadd.f32 %v1343_v5, %v1967_v48  ;;  %v1698_v5 = vld [vmem:[#allocation3 + $0xd0] sm:$0xff]   ;;  %v1701_v29 = vld [vmem:[#allocation3 + $0xe8] sm:$0xff]  }
 0x4a4   :  { %v1702_v30 = vld [vmem:[#allocation3 + $0xf0] sm:$0xff]  }
 0x4a5   :  { %1721 = vtanh.f32 %v668_v31  ;;  %v1703_v31 = vld [vmem:[#allocation3 + $0xf8] sm:$0xff]  }
 0x4ac   :  { %v1720_v32 = vpop.eup %1719 }
 0x4ad   :  { %v718_v33 = vpack.c.bf16 %v1720_v32, %v1720_v32  ;;  %v1704_v32 = vld [vmem:[#allocation3 + $0x100] sm:$0xff]  }
 0x4af   :  { %v1722_v34 = vpop.eup %1721  ;;  %1603 = vmatmul.mubr.bf16.vlgmr.msra.gmra.mrb[20].mxu1 %v718_v33 }
 0x4b0   :  { %675 = vst [vmem:[#allocation2 + $0x6] sm:$0x3] %v1722_v34  ;;  %v674_v36 = vpack.c.bf16 %v1722_v34, %v1722_v34  ;;  %1607 = vmatpush3.bf16.msra.mxu1 %v1814_v1  ;;  %1622 = vmatprep.mubr.msk.bf16.mxu1 %vm1765_vm0, %v1764_v0 }
 0x4b1   :  { %1608 = vmatprep.subr.bf16.mxu1 %v1764_v0 }
 0x4b2   :  { %751 = vmatprep.mubr.bf16.mxu0 %v674_v36 }
 0x4b3   :  { %752 = vmatmul.mubr.bf16.vlgmr.msra.gmra.mrb[20].mxu0 %v718_v33 }
 0x4b4   :  { %1388 = vmatpush3.bf16.msra.mxu0 %v1835_v9  ;;  %1609 = vmatpush3.bf16.msra.mxu1 %v1817_v2 }
 0x4b5   :  { %1389 = vmatprep.subr.bf16.mxu0 %v1838_v10  ;;  %1610 = vmatprep.subr.bf16.mxu1 %v1764_v0 }
 0x4b8   :  { %1390 = vmatpush3.bf16.msra.mxu0 %v1842_v11  ;;  %1611 = vmatpush3.bf16.msra.mxu1 %v1820_v3 }
 0x4b9   :  { %1391 = vmatprep.subr.bf16.mxu0 %v1846_v12  ;;  %1612 = vmatprep.subr.bf16.mxu1 %v1764_v0 }
 0x4bc   :  { %1392 = vmatpush3.bf16.msra.mxu0 %v1850_v14  ;;  %1613 = vmatpush3.bf16.msra.mxu1 %v1828_v6 }
 0x4bd   :  { %1393 = vmatprep.subr.bf16.mxu0 %v1888_v19  ;;  %1614 = vmatprep.subr.bf16.mxu1 %v1764_v0 }
 0x4c0   :  { %1394 = vmatpush3.bf16.msra.mxu0 %v1891_v20  ;;  %1615 = vmatpush3.bf16.msra.mxu1 %v1833_v8 }
 0x4c1   :  { %1395 = vmatprep.subr.bf16.mxu0 %v1894_v21  ;;  %1616 = vmatprep.subr.bf16.mxu1 %v1764_v0 }
 0x4c4   :  { %1396 = vmatpush3.bf16.msra.mxu0 %v1896_v22  ;;  %1617 = vmatpush3.bf16.msra.mxu1 %v1848_v13 }
 0x4c5   :  { %1397 = vmatprep.subr.bf16.mxu0 %v1900_v23  ;;  %1618 = vmatprep.subr.bf16.mxu1 %v1764_v0 }
 0x4c8   :  { %1398 = vmatpush3.bf16.msra.mxu0 %v1902_v24  ;;  %1619 = vmatpush3.bf16.msra.mxu1 %v1856_v15 }
 0x4c9   :  { %1399 = vmatprep.subr.bf16.mxu0 %v1906_v25  ;;  %1620 = vmatprep.subr.bf16.mxu1 %v1764_v0 }
 0x4cc   :  { %1400 = vmatpush3.bf16.msra.mxu0 %v1908_v26  ;;  %1621 = vmatpush3.bf16.msra.mxu1 %v1861_v16 }
 0x4cd   :  { %1401 = vmatprep.subr.bf16.mxu0 %v1912_v27  ;;  %1626 = vmatprep.subr.bf16.mxu1 %v1764_v0 }
 0x4d0   :  { %1402 = vmatpush3.bf16.msra.mxu0 %v1914_v28 }
 0x4d1   :  { %1418 = vmatprep.subr.bf16.mxu0 %v1831_v7 }
 0x582   :  { %v796_v38 = vpop.f32.mrb[20].mxu1 }
 0x583   :  { %v803_v39 = vrot.slane %v796_v38, 6  ;;  %v1604_v40 = vpop.f32.mrb[21].mxu1 }
 0x584   :  { %v799_v41 = vpop.f32.mrb[22].mxu1 }
 0x585   :  { %v805_v42 = vadd.f32 %v803_v39, %v1925_v35  ;;  %v1605_v43 = vpop.f32.mrb[23].mxu1 }
 0x586   :  { %v1372_v44 = vpop.f32.mrb[20].mxu0 }
 0x587   :  { %1723 = vtanh.f32 %v805_v42  ;;  %v1373_v45 = vpop.f32.mrb[21].mxu0  ;;  %v1065_v42 = vld [vmem:[#allocation2] sm:$0xff] }
 0x588   :  { %v1374_v46 = vadd.f32 %v1373_v45, %v1372_v44  ;;  %v1375_v47 = vpop.f32.mrb[22].mxu0 }
 0x589   :  { %v1376_v49 = vpop.f32.mrb[23].mxu0 }
 0x58a   :  { %v754_v50 = vadd.f32 %v1374_v46, %v1967_v48 }
 0x58c   :  { %1725 = vtanh.f32 %v754_v50 }
 0x591   :  { %v1724_v51 = vpop.eup %1723 }
 0x592   :  { %v807_v52 = vpack.c.bf16 %v1724_v51, %v1724_v51 }
 0x594   :  { %v811_v53 = vrot.slane %v807_v52, 1 }
 0x596   :  { %v1726_v54 = vpop.eup %1725  ;;  %1623 = vmatmul.mubr.bf16.vlgmr.msra.gmra.mrb[24].mxu1 %v811_v53 }
 0x597   :  { %761 = vst [vmem:[#allocation2 + $0x8] sm:$0x3] %v1726_v54  ;;  %v760_v55 = vpack.c.bf16 %v1726_v54, %v1726_v54  ;;  %1627 = vmatpush3.bf16.msra.mxu1 %v1814_v1  ;;  %1642 = vmatprep.mubr.msk.bf16.mxu1 %vm1765_vm0, %v1764_v0 }
 0x598   :  { %1628 = vmatprep.subr.bf16.mxu1 %v1764_v0 }
 0x599   :  { %847 = vmatprep.mubr.bf16.mxu0 %v760_v55 }
 0x59a   :  { %848 = vmatmul.mubr.bf16.vlgmr.msra.gmra.mrb[24].mxu0 %v811_v53 }
 0x59b   :  { %1419 = vmatpush3.bf16.msra.mxu0 %v1835_v9  ;;  %1629 = vmatpush3.bf16.msra.mxu1 %v1817_v2 }
 0x59c   :  { %1420 = vmatprep.subr.bf16.mxu0 %v1838_v10  ;;  %1630 = vmatprep.subr.bf16.mxu1 %v1764_v0 }
 0x59f   :  { %1421 = vmatpush3.bf16.msra.mxu0 %v1842_v11  ;;  %1631 = vmatpush3.bf16.msra.mxu1 %v1820_v3 }
 0x5a0   :  { %1422 = vmatprep.subr.bf16.mxu0 %v1846_v12  ;;  %1632 = vmatprep.subr.bf16.mxu1 %v1764_v0 }
 0x5a3   :  { %1423 = vmatpush3.bf16.msra.mxu0 %v1850_v14  ;;  %1633 = vmatpush3.bf16.msra.mxu1 %v1828_v6 }
 0x5a4   :  { %1424 = vmatprep.subr.bf16.mxu0 %v1888_v19  ;;  %1634 = vmatprep.subr.bf16.mxu1 %v1764_v0 }
 0x5a7   :  { %1425 = vmatpush3.bf16.msra.mxu0 %v1891_v20  ;;  %1635 = vmatpush3.bf16.msra.mxu1 %v1833_v8 }
 0x5a8   :  { %1426 = vmatprep.subr.bf16.mxu0 %v1894_v21  ;;  %1636 = vmatprep.subr.bf16.mxu1 %v1764_v0 }
 0x5ab   :  { %1427 = vmatpush3.bf16.msra.mxu0 %v1896_v22  ;;  %1637 = vmatpush3.bf16.msra.mxu1 %v1848_v13 }
 0x5ac   :  { %1428 = vmatprep.subr.bf16.mxu0 %v1900_v23  ;;  %1638 = vmatprep.subr.bf16.mxu1 %v1764_v0 }
 0x5af   :  { %1429 = vmatpush3.bf16.msra.mxu0 %v1902_v24  ;;  %1639 = vmatpush3.bf16.msra.mxu1 %v1856_v15 }
 0x5b0   :  { %1430 = vmatprep.subr.bf16.mxu0 %v1906_v25  ;;  %1640 = vmatprep.subr.bf16.mxu1 %v1764_v0 }
 0x5b3   :  { %1431 = vmatpush3.bf16.msra.mxu0 %v1908_v26  ;;  %1641 = vmatpush3.bf16.msra.mxu1 %v1861_v16 }
 0x5b4   :  { %1432 = vmatprep.subr.bf16.mxu0 %v1912_v27  ;;  %1646 = vmatprep.subr.bf16.mxu1 %v1764_v0 }
 0x5b7   :  { %1433 = vmatpush3.bf16.msra.mxu0 %v1914_v28 }
 0x5b8   :  { %1449 = vmatprep.subr.bf16.mxu0 %v1831_v7 }
 0x669   :  { %v892_v1 = vpop.f32.mrb[24].mxu1 }
 0x66a   :  { %v899_v2 = vrot.slane %v892_v1, 4  ;;  %v1624_v3 = vpop.f32.mrb[25].mxu1 }
 0x66b   :  { %v895_v6 = vpop.f32.mrb[26].mxu1 }
 0x66c   :  { %v901_v8 = vadd.f32 %v899_v2, %v1925_v35  ;;  %v1625_v13 = vpop.f32.mrb[27].mxu1 }
 0x66d   :  { %v1403_v15 = vpop.f32.mrb[24].mxu0 }
 0x66e   :  { %1727 = vtanh.f32 %v901_v8  ;;  %v1404_v56 = vpop.f32.mrb[25].mxu0 }
 0x66f   :  { %v1405_v57 = vadd.f32 %v1404_v56, %v1403_v15  ;;  %v1406_v16 = vpop.f32.mrb[26].mxu0 }
 0x670   :  { %v1407_v58 = vpop.f32.mrb[27].mxu0 }
 0x671   :  { %v850_v59 = vadd.f32 %v1405_v57, %v1967_v48 }
 0x673   :  { %1729 = vtanh.f32 %v850_v59 }
 0x678   :  { %v1728_v60 = vpop.eup %1727 }
 0x679   :  { %v903_v37 = vpack.c.bf16 %v1728_v60, %v1728_v60 }
 0x67b   :  { %v907_v61 = vrot.slane %v903_v37, 2 }
 0x67d   :  { %v1730_v7 = vpop.eup %1729  ;;  %1643 = vmatmul.mubr.bf16.vlgmr.msra.gmra.mrb[28].mxu1 %v907_v61 }
 0x67e   :  { %857 = vst [vmem:[#allocation2 + $0xa] sm:$0x3] %v1730_v7  ;;  %v856_v62 = vpack.c.bf16 %v1730_v7, %v1730_v7  ;;  %1662 = vmatprep.mubr.msk.bf16.mxu1 %vm1765_vm0, %v1764_v0 }
 0x680   :  { %943 = vmatprep.mubr.bf16.mxu0 %v856_v62 }
 0x681   :  { %944 = vmatmul.mubr.bf16.vlgmr.msra.gmra.mrb[28].mxu0 %v907_v61 }
 0x682   :  { %1450 = vmatpush3.bf16.msra.mxu0 %v1835_v9  ;;  %v1697_v9 = vld [vmem:[#allocation3 + $0xc8] sm:$0xff]  }
 0x683   :  { %1451 = vmatprep.subr.bf16.mxu0 %v1838_v10  ;;  %1647 = vmatpush3.bf16.msra.mxu1 %v1697_v9 }
 0x684   :  { %1648 = vmatprep.subr.bf16.mxu1 %v1764_v0 }
 0x686   :  { %1452 = vmatpush3.bf16.msra.mxu0 %v1842_v11 }
 0x687   :  { %1453 = vmatprep.subr.bf16.mxu0 %v1846_v12  ;;  %1649 = vmatpush3.bf16.msra.mxu1 %v1698_v5 }
 0x688   :  { %1650 = vmatprep.subr.bf16.mxu1 %v1764_v0 }
 0x68a   :  { %1454 = vmatpush3.bf16.msra.mxu0 %v1850_v14 }
 0x68b   :  { %1455 = vmatprep.subr.bf16.mxu0 %v1888_v19  ;;  %1651 = vmatpush3.bf16.msra.mxu1 %v1699_v17 }
 0x68c   :  { %1652 = vmatprep.subr.bf16.mxu1 %v1764_v0 }
 0x68e   :  { %1456 = vmatpush3.bf16.msra.mxu0 %v1891_v20 }
 0x68f   :  { %1457 = vmatprep.subr.bf16.mxu0 %v1894_v21  ;;  %1653 = vmatpush3.bf16.msra.mxu1 %v1700_v18 }
 0x690   :  { %1654 = vmatprep.subr.bf16.mxu1 %v1764_v0 }
 0x692   :  { %1458 = vmatpush3.bf16.msra.mxu0 %v1896_v22 }
 0x693   :  { %1459 = vmatprep.subr.bf16.mxu0 %v1900_v23  ;;  %1655 = vmatpush3.bf16.msra.mxu1 %v1701_v29 }
 0x694   :  { %1656 = vmatprep.subr.bf16.mxu1 %v1764_v0 }
 0x696   :  { %1460 = vmatpush3.bf16.msra.mxu0 %v1902_v24 }
 0x697   :  { %1461 = vmatprep.subr.bf16.mxu0 %v1906_v25  ;;  %1657 = vmatpush3.bf16.msra.mxu1 %v1702_v30 }
 0x698   :  { %1658 = vmatprep.subr.bf16.mxu1 %v1764_v0 }
 0x69a   :  { %1462 = vmatpush3.bf16.msra.mxu0 %v1908_v26 }
 0x69b   :  { %1463 = vmatprep.subr.bf16.mxu0 %v1912_v27  ;;  %1659 = vmatpush3.bf16.msra.mxu1 %v1703_v31 }
 0x69c   :  { %1660 = vmatprep.subr.bf16.mxu1 %v1764_v0  ;;  %v1211_v0 = vld [vmem:[%s2196_s3 + $0x2] ss:$0 sm:$0xff] }
 0x69e   :  { %1464 = vmatpush3.bf16.msra.mxu0 %v1914_v28 }
 0x69f   :  { %1661 = vmatpush3.bf16.msra.mxu1 %v1704_v32 }
 0x750   :  { %v988_v10 = vpop.f32.mrb[28].mxu1 }
 0x751   :  { %v995_v11 = vrot.slane %v988_v10, 2  ;;  %v1644_v12 = vpop.f32.mrb[29].mxu1 }
 0x752   :  { %v991_v14 = vpop.f32.mrb[30].mxu1 }
 0x753   :  { %v997_v19 = vadd.f32 %v995_v11, %v1925_v35  ;;  %v1645_v20 = vpop.f32.mrb[31].mxu1 }
 0x754   :  { %v1434_v21 = vpop.f32.mrb[28].mxu0 }
 0x755   :  { %1731 = vtanh.f32 %v997_v19  ;;  %v1435_v22 = vpop.f32.mrb[29].mxu0 }
 0x756   :  { %v1436_v23 = vadd.f32 %v1435_v22, %v1434_v21  ;;  %v1437_v24 = vpop.f32.mrb[30].mxu0 }
 0x757   :  { %v1438_v25 = vpop.f32.mrb[31].mxu0 }
 0x758   :  { %v946_v26 = vadd.f32 %v1436_v23, %v1967_v48 }
 0x75a   :  { %1733 = vtanh.f32 %v946_v26 }
 0x75f   :  { %v1732_v27 = vpop.eup %1731 }
 0x760   :  { %1163 = vst [vmem:[%s2198_s5 - $0x6] sm:$0xc0] %v1732_v27  ;;  %v999_v28 = vpack.c.bf16 %v1732_v27, %v1732_v27 }
 0x762   :  { %v1003_v35 = vrot.slane %v999_v28, 3 }
 0x764   :  { %v1734_v63 = vpop.eup %1733 }
 0x765   :  { %953 = vst [vmem:[#allocation2 + $0xc] sm:$0x3] %v1734_v63  ;;  %v952_v4 = vpack.c.bf16 %v1734_v63, %v1734_v63 }
 0x767   :  { %1039 = vmatprep.mubr.bf16.mxu0 %v952_v4 }
 0x768   :  { %1040 = vmatmul.mubr.bf16.vlgmr.msra.gmra.mrb[32].mxu0 %v1003_v35 }
 0x83b   :  { %v1465_v33 = vpop.f32.mrb[32].mxu0 }
 0x83c   :  { %v1466_v34 = vpop.f32.mrb[33].mxu0 }
 0x83d   :  { %v1467_v36 = vadd.f32 %v1466_v34, %v1465_v33  ;;  %v1468_v38 = vpop.f32.mrb[34].mxu0 }
 0x83e   :  { %v1469_v39 = vpop.f32.mrb[35].mxu0 }
 0x83f   :  { %v1042_v40 = vadd.f32 %v1467_v36, %v1967_v48 }
 0x841   :  { %1735 = vtanh.f32 %v1042_v40 }
 0x84b   :  { %v1736_v41 = vpop.eup %1735 }
 0x84c   :  { %1048 = vst [vmem:[#allocation2 + $0xe] sm:$0x3] %v1736_v41  ;;  %1220 = vst [vmem:[%s2198_s5 + $0x2] sm:$0x3] %v1736_v41 }
 0x853   :  { %v1066_v43 = vld [vmem:[#allocation2 + $0x8] sm:$0xff] }
 0x854   :  { %v1067_v44 = vpack.c.bf16 %v1066_v43, %v1065_v42 }
 0x856   :  { %1663 = vmatmul.mubr.bf16.vlgmr.msra.gmra.mrb[32].mxu1 %v1067_v44 }
 0x929   :  { %v1154_v45 = vpop.f32.mrb[32].mxu1 }
 0x92a   :  { %v1155_v46 = vadd.f32 %v1211_v0, %v1154_v45  ;;  %v1664_v47 = vpop.f32.mrb[33].mxu1 }
 0x92b   :  { %v1157_v49 = vpop.f32.mrb[34].mxu1 }
 0x92c   :  { %1161 = vst [vmem:[%s2197_s4] sm:$0xff] %v1155_v46  ;;  %v1158_v48 = vadd.f32 %v1211_v0, %v1157_v49  ;;  %v1665_v50 = vpop.f32.mrb[35].mxu1 }
 0x92e   :  { %1162 = vst [vmem:[%s2197_s4 + $0x8] sm:$0xff] %v1158_v48 }
 0x92f   :  { %1174 = vsyncpa [#allocation4], 1 }

</bundles_post_ra>
